<compile_context>
chip_gen: v7x
topology: tpu7x:2x2x1
jax: 0.10.0
libtpu: 0.0.40
codegen_flags: <defaults>
</compile_context>

<pallas_src>
import jax
import jax.numpy as jnp
from jax.experimental import pallas as pl
from jax.experimental.pallas import tpu as pltpu


def _relu_kernel(x_ref, o_ref):
    # One VPU vmax per vreg; the binding resource is DMA/HBM bandwidth.
    o_ref[...] = jnp.maximum(x_ref[...], 0).astype(o_ref.dtype)


_MAX_LANE_COLS = 2048   # lane-dense last-dim cap (multiple of 128)
_FALLBACK_COLS = 512    # used only when x.size is not a multiple of 128


def _pick_cols(total):
    """Largest multiple of 128 (<= _MAX_LANE_COLS) that divides `total`."""
    c = _MAX_LANE_COLS
    while c >= 128:
        if total % c == 0:
            return c, True
        c -= 128
    return _FALLBACK_COLS, False


def _target_block_bytes():
    """Per-block byte budget, tuned per TPU generation."""
    try:
        kind = jax.devices()[0].device_kind.lower()
    except Exception:  # pragma: no cover - never fatal, just pick a default
        kind = ""
    if "v2" in kind or "v3" in kind or "v4" in kind or "v5" in kind:
        # ~820 GB/s HBM (v5e): 2 MiB blocks already hide per-step overhead.
        return 2 * 1024 * 1024
    # v6e / v7x (1.4-3.2 TB/s HBM): bigger blocks amortize grid-step overhead.
    return 6 * 1024 * 1024


def relu_pallas(x, *, donate_input=False):
    """Apply ReLU(x) = max(0, x) with a Pallas TPU kernel (any rank/dtype)."""
    orig_shape = x.shape
    dtype = x.dtype
    total = x.size

    if total == 0:
        return x

    itemsize = jnp.dtype(dtype).itemsize
    # Sublane packing multiple: 8 for 32-bit, 16 for 16-bit, 32 for 8-bit.
    sublane = {4: 8, 2: 16, 1: 32}.get(itemsize, 8)

    cols, exact = _pick_cols(total)
    flat = x.reshape(-1)

    if exact:
        # Zero-copy path: no pad, no trailing slice, reshape is a bitcast.
        n_rows = total // cols
        x2 = flat.reshape(n_rows, cols)
    else:
        # Pad only to a multiple of cols (< cols extra elements); the partial
        # last grid block is handled by Pallas's masked stores.
        n_rows = pl.cdiv(total, cols)
        flat = jnp.pad(flat, (0, n_rows * cols - total))
        x2 = flat.reshape(n_rows, cols)

    block_bytes = _target_block_bytes()
    tm = max(sublane, (block_bytes // (cols * itemsize)) // sublane * sublane)

    # Never use a block taller than the (sublane-rounded) array.
    n_rows_up = pl.cdiv(n_rows, sublane) * sublane
    tm = min(tm, n_rows_up)

    # Keep >= 2 grid steps when possible so the "parallel" axis can actually
    # be split across both TensorCores on v7x (grid=(1,) idles one TC).
    if n_rows_up > sublane and pl.cdiv(n_rows, tm) < 2:
        tm = max(sublane, pl.cdiv(pl.cdiv(n_rows, 2), sublane) * sublane)

    grid = (pl.cdiv(n_rows, tm),)

    donate = donate_input and exact
    call_kwargs = {}
    if donate:
        # Output reuses x's HBM buffer (caller must not reuse x afterwards).
        call_kwargs["input_output_aliases"] = {0: 0}

    out2 = pl.pallas_call(
        _relu_kernel,
        out_shape=jax.ShapeDtypeStruct((n_rows, cols), dtype),
        grid_spec=pltpu.PrefetchScalarGridSpec(
            num_scalar_prefetch=0,
            grid=grid,
            in_specs=[pl.BlockSpec((tm, cols), lambda i: (i, 0))],
            out_specs=pl.BlockSpec((tm, cols), lambda i: (i, 0)),
        ),
        compiler_params=pltpu.CompilerParams(
            # Independent axis -> megacore sharding across both TCs on v7x.
            dimension_semantics=("parallel",),
            # Headroom for 2 input + 2 output double-buffered blocks; lifts the
            # 16 MiB default scoped limit on v5e, stays <= 48 MiB on v7x.
            vmem_limit_bytes=max(32 * 1024 * 1024, 8 * block_bytes),
            # Let XLA fuse the reshape / pad producer into the operand instead
            # of materializing a temp (not combinable with buffer aliasing).
            allow_input_fusion=None if donate else [True],
        ),
        **call_kwargs,
    )(x2)

    if exact:
        return out2.reshape(orig_shape)
    return out2.reshape(-1)[:total].reshape(orig_shape)


if __name__ == "__main__":
    # ReLU module has no parameters (_weights / _bias are empty tensors).
    key = jax.random.PRNGKey(0)
    x = jax.random.normal(key, (2, 4, 16, 16), dtype=jnp.float32)  # NCHW

    relu = jax.jit(relu_pallas)
    y = relu(x)
    jax.block_until_ready(y)

    # Sanity check against plain-JAX reference (torch.max(0.0, x) semantics).
    ref = jnp.maximum(x, 0.0)
    assert y.shape == x.shape and y.dtype == x.dtype
    assert jnp.array_equal(y, ref)

    # Also exercise the non-divisible (pad + partial-last-block) fallback path.
    x_odd = jax.random.normal(jax.random.PRNGKey(1), (7, 13), dtype=jnp.float32)
    y_odd = relu_pallas(x_odd)
    jax.block_until_ready(y_odd)
    assert y_odd.shape == x_odd.shape and y_odd.dtype == x_odd.dtype
    assert jnp.array_equal(y_odd, jnp.maximum(x_odd, 0.0))

    print("KERNEL_OK")
</pallas_src>

<mosaic_0001>
module attributes {stable_mosaic.version = 11 : i64} {
  func.func @_relu_kernel(%arg0: i32, %arg1: memref<8x2048xf32, #tpu.memory_space<vmem>>, %arg2: memref<8x2048xf32, #tpu.memory_space<vmem>>) attributes {dimension_semantics = [#tpu.dimension_semantics<parallel>], iteration_bounds = array<i64: 1>, scalar_prefetch = 0 : i64, scratch_operands = 0 : i64, tpu.core_type = #tpu.core_type<tc>, window_params = [{transform_indices = @transform_0, window_bounds = array<i64: 8, 2048>}, {transform_indices = @transform_1, window_bounds = array<i64: 8, 2048>}]} {
    %c0 = arith.constant 0 : index
    %c0_0 = arith.constant 0 : index
    %0 = vector.load %arg1[%c0, %c0_0] : memref<8x2048xf32, #tpu.memory_space<vmem>>, vector<8x2048xf32>
    %cst = arith.constant 0.000000e+00 : f32
    %1 = vector.broadcast %cst : f32 to vector<8x2048xf32>
    %2 = arith.maximumf %0, %1 : vector<8x2048xf32>
    %c0_1 = arith.constant 0 : index
    %c0_2 = arith.constant 0 : index
    %3 = vector.load %arg2[%c0_1, %c0_2] : memref<8x2048xf32, #tpu.memory_space<vmem>>, vector<8x2048xf32>
    tpu.vector_store %arg2[%c0_1, %c0_2], %2 {strides = array<i32>} : memref<8x2048xf32, #tpu.memory_space<vmem>>, vector<8x2048xf32>,
    return
  }
  func.func @transform_0(%arg0: i32) -> (i32, i32) {
    %c0_i32 = arith.constant 0 : i32
    %c0_i32_0 = arith.constant 0 : i32
    return %arg0, %c0_i32 : i32, i32
  }
  func.func @transform_1(%arg0: i32) -> (i32, i32) {
    %c0_i32 = arith.constant 0 : i32
    %c0_i32_0 = arith.constant 0 : i32
    return %arg0, %c0_i32 : i32, i32
  }
}

</mosaic_0001>

<bundles_post_ra>
// kernel: relu_pallas.1
= control target key start
LH: loop header
LB: loop body
LE: loop exit
PB: predicated region body
PF: predicated region fallthrough
CT: control target
= control target key end

     0   :  { %s105_s0 = inlined_call_operand.vmem [shape: f32[1,2048], index: 0, kind: input, shape index: {}]   ;;  %s106_s1 = inlined_call_operand.vmem [shape: f32[1,2048], index: 1, kind: output, shape index: {}]  }
   0x1   :  { %v8_v0 = vld [vmem:[%s105_s0] sm:$0xff]  ;;  %v9_v1 = vld [vmem:[%s105_s0 + $0x8] sm:$0xff] }
   0x2   :  { %v24_v2 = vmax.f32 %v8_v0, 0.0  ;;  %v25_v3 = vmax.f32 %v9_v1, 0.0 }
   0x4   :  { %71 = vst [vmem:[%s106_s1] sm:$0xff] %v24_v2  ;;  %73 = vst [vmem:[%s106_s1 + $0x8] sm:$0xff] %v25_v3 }

</bundles_post_ra>
